<compile_context>
chip_gen: v5e
topology: v5e:2x2
jax: 0.10.0
libtpu: 0.0.40
codegen_flags: <defaults>
</compile_context>

<pallas_src>
import functools

import jax
import jax.numpy as jnp
from jax.experimental import pallas as pl
from jax.experimental.pallas import tpu as pltpu

F_IN, HIDDEN, F_OUT = 3, 50, 1
F_PAD = 8        # input features padded 3 -> 8 (row 3 = constant 1 for bias folding)
H_PAD = 128      # hidden dim padded 50 -> 128 (slot 50 = constant 1 for bias folding)
CHUNK_MAX = 512  # inner lane-chunk width (multiple of 128)
TB_MAX = 8192    # max batch-tile width (columns); ~0.3 MiB/step of streamed x


def regnet_kernel(x_ref, w1_ref, w2_ref, w3_ref, o_ref, *, chunk):
    # Feature-major: batch lives in the 128-lane axis of every operand.
    w1 = w1_ref[...]          # [H_PAD, F_PAD]   (b1 folded into column F_IN)
    w2 = w2_ref[...]          # [H_PAD, H_PAD]   (b2 folded into column HIDDEN)
    w3 = w3_ref[...]          # [F_OUT, H_PAD]   (b3 folded into column HIDDEN)
    n_chunks = x_ref.shape[1] // chunk

    def body(c, carry):
        j = pl.multiple_of(c * chunk, 128)
        xc = x_ref[:, pl.ds(j, chunk)]                                        # [F_PAD, chunk]
        h1 = jnp.maximum(jnp.dot(w1, xc, preferred_element_type=jnp.float32), 0.0)
        # Dropout(p=0.25) -> identity at inference.
        h2 = jnp.maximum(jnp.dot(w2, h1, preferred_element_type=jnp.float32), 0.0)
        # Dropout(p=0.25) -> identity at inference.
        o_ref[:, pl.ds(j, chunk)] = jnp.dot(w3, h2, preferred_element_type=jnp.float32)
        return carry

    jax.lax.fori_loop(0, n_chunks, body, 0, unroll=True)


def _round_up(n, m):
    return (n + m - 1) // m * m


def _choose_tile(B):
    """Batch-tile width: lane multiple of 128, fat enough to amortize grid
    overhead, and >= 2 grid steps when the batch allows (v7x megacore)."""
    b128 = _round_up(max(B, 1), 128)
    if b128 <= CHUNK_MAX:
        return b128                                        # single small step
    return min(TB_MAX, _round_up(b128 // 2, CHUNK_MAX))    # >= 2 balanced steps


def prepare_params(w1, b1, w2, b2, w3, b3):
    """One-time weight prep: transpose, zero-pad, and fold biases into the
    padded slots (exact since those slots were zero)."""
    f32 = jnp.float32
    w1T = jnp.zeros((H_PAD, F_PAD), f32)
    w1T = w1T.at[:HIDDEN, :F_IN].set(w1.T.astype(f32))
    w1T = w1T.at[:HIDDEN, F_IN].set(b1.reshape(-1).astype(f32))   # b1 via ones row of xT
    w1T = w1T.at[HIDDEN, F_IN].set(1.0)                           # propagate constant-1 slot
    w2T = jnp.zeros((H_PAD, H_PAD), f32)
    w2T = w2T.at[:HIDDEN, :HIDDEN].set(w2.T.astype(f32))
    w2T = w2T.at[:HIDDEN, HIDDEN].set(b2.reshape(-1).astype(f32))
    w2T = w2T.at[HIDDEN, HIDDEN].set(1.0)
    w3T = jnp.zeros((F_OUT, H_PAD), f32)
    w3T = w3T.at[:, :HIDDEN].set(w3.T.astype(f32))
    w3T = w3T.at[0, HIDDEN].set(b3.reshape(()).astype(f32))
    return w1T, w2T, w3T


@jax.jit
def regnet_forward(x, w1T, w2T, w3T):
    """x: [B, 3] (PyTorch layout); returns [B, 1]."""
    B = x.shape[0]
    f32 = jnp.float32

    tb = _choose_tile(B)
    b_pad = _round_up(_round_up(max(B, 1), 128), tb)
    chunk = tb if tb < CHUNK_MAX else CHUNK_MAX
    grid = (b_pad // tb,)

    # Feature-major zero-padded x with a constant-1 row for bias folding.
    # (Padded batch columns produce garbage outputs that are sliced away.)
    xT = jnp.zeros((F_PAD, b_pad), f32)
    xT = xT.at[:F_IN, :B].set(x.T.astype(f32))
    xT = xT.at[F_IN, :].set(1.0)

    const = lambda i: (0, 0)   # weights: VMEM-resident, never re-indexed
    cost = pl.CostEstimate(
        flops=2 * b_pad * (F_PAD * H_PAD + H_PAD * H_PAD + H_PAD * F_OUT),
        transcendentals=0,
        bytes_accessed=4 * (F_PAD * b_pad + F_OUT * b_pad
                            + H_PAD * F_PAD + H_PAD * H_PAD + F_OUT * H_PAD),
    )

    outT = pl.pallas_call(
        functools.partial(regnet_kernel, chunk=chunk),
        out_shape=jax.ShapeDtypeStruct((F_OUT, b_pad), f32),
        grid=grid,
        in_specs=[
            pl.BlockSpec((F_PAD, tb), lambda i: (0, i)),    # xT: streamed over batch
            pl.BlockSpec((H_PAD, F_PAD), const),            # w1T (+b1)
            pl.BlockSpec((H_PAD, H_PAD), const),            # w2T (+b2)
            pl.BlockSpec((F_OUT, H_PAD), const),            # w3T (+b3)
        ],
        out_specs=pl.BlockSpec((F_OUT, tb), lambda i: (0, i)),   # lane-dense [1, tb]
        compiler_params=pltpu.CompilerParams(
            dimension_semantics=("parallel",),              # megacore on v7x
            vmem_limit_bytes=32 * 1024 * 1024,              # safe on v5e/v6e/v7x
        ),
        cost_estimate=cost,
    )(xT, w1T, w2T, w3T)

    # Back to the PyTorch [B, 1] convention; drop batch padding.
    return outT[:, :B].T.reshape(B, 1)


def init_params(key):
    # Deterministic synthetic init mimicking nn.Linear shapes:
    # HIDDEN_1: Linear(3, 50), HIDDEN_2: Linear(50, 50), OUT: Linear(50, 1)
    k1, k2, k3, k4, k5, k6 = jax.random.split(key, 6)
    w1 = jax.random.uniform(k1, (3, 50), jnp.float32, -1.0, 1.0) / jnp.sqrt(3.0)
    b1 = jax.random.uniform(k2, (1, 50), jnp.float32, -1.0, 1.0) / jnp.sqrt(3.0)
    w2 = jax.random.uniform(k3, (50, 50), jnp.float32, -1.0, 1.0) / jnp.sqrt(50.0)
    b2 = jax.random.uniform(k4, (1, 50), jnp.float32, -1.0, 1.0) / jnp.sqrt(50.0)
    w3 = jax.random.uniform(k5, (50, 1), jnp.float32, -1.0, 1.0) / jnp.sqrt(50.0)
    b3 = jax.random.uniform(k6, (1, 1), jnp.float32, -1.0, 1.0) / jnp.sqrt(50.0)
    return w1, b1, w2, b2, w3, b3


def regnet_reference(x, w1, b1, w2, b2, w3, b3):
    h1 = jnp.maximum(x @ w1 + b1, 0.0)
    h2 = jnp.maximum(h1 @ w2 + b2, 0.0)
    return h2 @ w3 + b3


if __name__ == "__main__":
    key = jax.random.PRNGKey(0)
    kx, kp = jax.random.split(key)
    B = 8
    x = jax.random.normal(kx, (B, 3), jnp.float32)           # batch=8, features=3
    params = init_params(kp)

    # One-time weight prep (hoisted out of the hot path), then jitted forward.
    w1T, w2T, w3T = prepare_params(*params)
    out = regnet_forward(x, w1T, w2T, w3T)
    out = jax.block_until_ready(out)

    ref = regnet_reference(x, *params)
    assert out.shape == (B, 1)
    assert jnp.allclose(out, ref, atol=1e-4, rtol=1e-4), "mismatch vs reference"
    print("KERNEL_OK")
</pallas_src>

<mosaic_0001>
module attributes {stable_mosaic.version = 11 : i64} {
  func.func @regnet_kernel(%arg0: i32, %arg1: memref<8x128xf32, #tpu.memory_space<vmem>>, %arg2: memref<128x8xf32, #tpu.memory_space<vmem>>, %arg3: memref<128x128xf32, #tpu.memory_space<vmem>>, %arg4: memref<1x128xf32, #tpu.memory_space<vmem>>, %arg5: memref<1x128xf32, #tpu.memory_space<vmem>>) attributes {dimension_semantics = [#tpu.dimension_semantics<parallel>], iteration_bounds = array<i64: 1>, scalar_prefetch = 0 : i64, scratch_operands = 0 : i64, tpu.core_type = #tpu.core_type<tc>, window_params = [{transform_indices = @transform_0, window_bounds = array<i64: 8, 128>}, {pipeline_mode = #tpu.pipeline_mode<synchronous>, transform_indices = @transform_1, window_bounds = array<i64: 128, 8>}, {pipeline_mode = #tpu.pipeline_mode<synchronous>, transform_indices = @transform_2, window_bounds = array<i64: 128, 128>}, {pipeline_mode = #tpu.pipeline_mode<synchronous>, transform_indices = @transform_3, window_bounds = array<i64: 1, 128>}, {transform_indices = @transform_4, window_bounds = array<i64: 1, 128>}]} {
    %c0 = arith.constant 0 : index
    %c0_0 = arith.constant 0 : index
    %0 = vector.load %arg2[%c0, %c0_0] : memref<128x8xf32, #tpu.memory_space<vmem>>, vector<128x8xf32>
    %c0_1 = arith.constant 0 : index
    %c0_2 = arith.constant 0 : index
    %1 = vector.load %arg3[%c0_1, %c0_2] : memref<128x128xf32, #tpu.memory_space<vmem>>, vector<128x128xf32>
    %c0_3 = arith.constant 0 : index
    %c0_4 = arith.constant 0 : index
    %2 = vector.load %arg4[%c0_3, %c0_4] : memref<1x128xf32, #tpu.memory_space<vmem>>, vector<1x128xf32>
    %c0_i32 = arith.constant 0 : i32
    %c128_i32 = arith.constant 128 : i32
    %3 = arith.muli %c0_i32, %c128_i32 : i32
    %4 = tpu.assume_multiple %3, 128 : i32
    %c0_5 = arith.constant 0 : index
    %5 = arith.index_cast %4 : i32 to index
    %6 = vector.load %arg1[%c0_5, %5] : memref<8x128xf32, #tpu.memory_space<vmem>>, vector<8x128xf32>
    %cst = arith.constant dense<0.000000e+00> : vector<128x128xf32>
    %7 = tpu.matmul %0, %6, %cst {dimension_numbers = #tpu.dot_dimension_numbers<[1], [0], [0], [1], [0, 0, 1, 1], [], []>} : vector<128x8xf32>, vector<8x128xf32>, vector<128x128xf32> -> vector<128x128xf32>
    %cst_6 = arith.constant 0.000000e+00 : f32
    %8 = vector.broadcast %cst_6 : f32 to vector<128x128xf32>
    %9 = arith.maximumf %7, %8 : vector<128x128xf32>
    %cst_7 = arith.constant dense<0.000000e+00> : vector<128x128xf32>
    %10 = tpu.matmul %1, %9, %cst_7 {dimension_numbers = #tpu.dot_dimension_numbers<[1], [0], [0], [1], [0, 0, 1, 1], [], []>} : vector<128x128xf32>, vector<128x128xf32>, vector<128x128xf32> -> vector<128x128xf32>
    %cst_8 = arith.constant 0.000000e+00 : f32
    %11 = vector.broadcast %cst_8 : f32 to vector<128x128xf32>
    %12 = arith.maximumf %10, %11 : vector<128x128xf32>
    %cst_9 = arith.constant dense<0.000000e+00> : vector<1x128xf32>
    %13 = tpu.matmul %2, %12, %cst_9 {dimension_numbers = #tpu.dot_dimension_numbers<[1], [0], [0], [1], [0, 0, 1, 1], [], []>} : vector<1x128xf32>, vector<128x128xf32>, vector<1x128xf32> -> vector<1x128xf32>
    %c0_10 = arith.constant 0 : index
    %14 = arith.index_cast %4 : i32 to index
    %15 = vector.load %arg5[%c0_10, %14] : memref<1x128xf32, #tpu.memory_space<vmem>>, vector<1x128xf32>
    tpu.vector_store %arg5[%c0_10, %14], %13 {strides = array<i32>} : memref<1x128xf32, #tpu.memory_space<vmem>>, vector<1x128xf32>,
    %c1_i32 = arith.constant 1 : i32
    return
  }
  func.func @transform_0(%arg0: i32) -> (i32, i32) {
    %c0_i32 = arith.constant 0 : i32
    %c0_i32_0 = arith.constant 0 : i32
    return %c0_i32, %arg0 : i32, i32
  }
  func.func @transform_1(%arg0: i32) -> (i32, i32) {
    %c0_i32 = arith.constant 0 : i32
    %c0_i32_0 = arith.constant 0 : i32
    %c0_i32_1 = arith.constant 0 : i32
    return %c0_i32, %c0_i32_0 : i32, i32
  }
  func.func @transform_2(%arg0: i32) -> (i32, i32) {
    %c0_i32 = arith.constant 0 : i32
    %c0_i32_0 = arith.constant 0 : i32
    %c0_i32_1 = arith.constant 0 : i32
    return %c0_i32, %c0_i32_0 : i32, i32
  }
  func.func @transform_3(%arg0: i32) -> (i32, i32) {
    %c0_i32 = arith.constant 0 : i32
    %c0_i32_0 = arith.constant 0 : i32
    %c0_i32_1 = arith.constant 0 : i32
    return %c0_i32, %c0_i32_0 : i32, i32
  }
  func.func @transform_4(%arg0: i32) -> (i32, i32) {
    %c0_i32 = arith.constant 0 : i32
    %c0_i32_0 = arith.constant 0 : i32
    return %c0_i32, %arg0 : i32, i32
  }
}

</mosaic_0001>

<bundles_post_ra>
// kernel: regnet_forward.1
= control target key start
LH: loop header
LB: loop body
LE: loop exit
PB: predicated region body
PF: predicated region fallthrough
CT: control target
= control target key end

     0   :  { %vm51_vm0 = vcmask 64512   ;;  %s469_s0 = inlined_call_operand.vmem [shape: f32[8,128], index: 0, kind: input, shape index: {}]   ;;  %s470_s1 = inlined_call_operand.vmem [shape: f32[128,8], index: 1, kind: input, shape index: {}]   ;;  %s471_s2 = inlined_call_operand.vmem [shape: f32[128,128], index: 2, kind: input, shape index: {}]   ;;  %s472_s3 = inlined_call_operand.vmem [shape: f32[1,128], index: 3, kind: input, shape index: {}]   ;;  %s473_s4 = inlined_call_operand.vmem [shape: f32[1,128], index: 4, kind: output, shape index: {}]  }
   0x1   :  { %v50_v0 = vld [vmem:[%s469_s0] sm:$0xff]  ;;  %v28_v2 = vld [vmem:[%s470_s1 + $0x58] sm:$0xff]  ;;  %v18_v3 = vld [vmem:[%s470_s1 + $0x8] sm:$0xff] }
   0x2   :  { %v17_v1 = vld [vmem:[%s470_s1] sm:$0xff]  ;;  %115 = vmatpush.msra.mxu0 %v50_v0  ;;  %303 = vmatpush.msra.mxu2 %v50_v0  ;;  %v19_v5 = vld [vmem:[%s470_s1 + $0x10] sm:$0xff]  ;;  %v30_v6 = vld [vmem:[%s470_s1 + $0x68] sm:$0xff] }
   0x3   :  { %287 = vmatmul.msk.f32.vlgmr.msra.gmra.mxu0 %vm51_vm0, %v17_v1  ;;  %298 = vmatmul.msk.f32.vlgmr.msra.gmra.mxu2 %vm51_vm0, %v28_v2  ;;  %v29_v4 = vld [vmem:[%s470_s1 + $0x60] sm:$0xff]  ;;  %v20_v7 = vld [vmem:[%s470_s1 + $0x18] sm:$0xff]  ;;  %v31_v8 = vld [vmem:[%s470_s1 + $0x70] sm:$0xff] }
   0x4   :  { %v21_v9 = vld [vmem:[%s470_s1 + $0x20] sm:$0xff]  ;;  %v32_v10 = vld [vmem:[%s470_s1 + $0x78] sm:$0xff]  ;;  %v22_v11 = vld [vmem:[%s470_s1 + $0x28] sm:$0xff] }
   0x5   :  { %v23_v12 = vld [vmem:[%s470_s1 + $0x30] sm:$0xff]  ;;  %v24_v13 = vld [vmem:[%s470_s1 + $0x38] sm:$0xff]  ;;  %v25_v14 = vld [vmem:[%s470_s1 + $0x40] sm:$0xff] }
   0x6   :  { %v26_v15 = vld [vmem:[%s470_s1 + $0x48] sm:$0xff]  ;;  %v27_v16 = vld [vmem:[%s470_s1 + $0x50] sm:$0xff]  ;;  %v41_v49 = vld [vmem:[%s471_s2 + $0x40] sm:$0xff] }
   0x7   :  { %v33_v50 = vld [vmem:[%s471_s2] sm:$0xff]  ;;  %v42_v51 = vld [vmem:[%s471_s2 + $0x48] sm:$0xff]  ;;  %v43_v53 = vld [vmem:[%s471_s2 + $0x50] sm:$0xff] }
   0x8   :  { %v34_v52 = vld [vmem:[%s471_s2 + $0x8] sm:$0xff]  ;;  %v35_v54 = vld [vmem:[%s471_s2 + $0x10] sm:$0xff]  ;;  %v44_v55 = vld [vmem:[%s471_s2 + $0x58] sm:$0xff] }
   0x9   :  { %v36_v56 = vld [vmem:[%s471_s2 + $0x18] sm:$0xff]  ;;  %v45_v57 = vld [vmem:[%s471_s2 + $0x60] sm:$0xff]  ;;  %v46_v59 = vld [vmem:[%s471_s2 + $0x68] sm:$0xff] }
   0xa   :  { %v37_v58 = vld [vmem:[%s471_s2 + $0x20] sm:$0xff]  ;;  %v38_v60 = vld [vmem:[%s471_s2 + $0x28] sm:$0xff]  ;;  %v47_v61 = vld [vmem:[%s471_s2 + $0x70] sm:$0xff] }
   0xb   :  { %288 = vmatmul.msk.f32.gmra.mxu0 %vm51_vm0, %v18_v3  ;;  %299 = vmatmul.msk.f32.gmra.mxu2 %vm51_vm0, %v29_v4  ;;  %v39_v62 = vld [vmem:[%s471_s2 + $0x30] sm:$0xff]  ;;  %v48_v63 = vld [vmem:[%s471_s2 + $0x78] sm:$0xff] }
   0xc   :  { %v40_v0 = vld [vmem:[%s471_s2 + $0x38] sm:$0xff] }
  0x13   :  { %289 = vmatmul.msk.f32.gmra.mxu0 %vm51_vm0, %v19_v5  ;;  %300 = vmatmul.msk.f32.gmra.mxu2 %vm51_vm0, %v30_v6 }
  0x1b   :  { %290 = vmatmul.msk.f32.gmra.mxu0 %vm51_vm0, %v20_v7  ;;  %301 = vmatmul.msk.f32.gmra.mxu2 %vm51_vm0, %v31_v8 }
  0x23   :  { %291 = vmatmul.msk.f32.gmra.mxu0 %vm51_vm0, %v21_v9  ;;  %302 = vmatmul.msk.f32.gmra.mxu2 %vm51_vm0, %v32_v10 }
  0x2b   :  { %292 = vmatmul.msk.f32.gmra.mxu0 %vm51_vm0, %v22_v11 }
  0x33   :  { %293 = vmatmul.msk.f32.gmra.mxu0 %vm51_vm0, %v23_v12 }
  0x3b   :  { %294 = vmatmul.msk.f32.gmra.mxu0 %vm51_vm0, %v24_v13 }
  0x43   :  { %295 = vmatmul.msk.f32.gmra.mxu0 %vm51_vm0, %v25_v14 }
  0x4b   :  { %296 = vmatmul.msk.f32.gmra.mxu0 %vm51_vm0, %v26_v15 }
  0x53   :  { %297 = vmatmul.msk.f32.gmra.mxu0 %vm51_vm0, %v27_v16 }
  0x80   :  { %v412_v17 = vpop.f32.mrf.mxu0 }
  0x81   :  { %v165_v48 = vmax.f32 %v412_v17, 0.0 }
  0x86   :  { %v150_v18 = vpop.f32.mrf.mxu2 }
  0x87   :  { %v176_v32 = vmax.f32 %v150_v18, 0.0 }
  0x88   :  { %v120_v19 = vpop.f32.mrf.mxu0 }
  0x89   :  { %v166_v47 = vmax.f32 %v120_v19, 0.0 }
  0x8e   :  { %v153_v20 = vpop.f32.mrf.mxu2 }
  0x8f   :  { %v177_v31 = vmax.f32 %v153_v20, 0.0 }
  0x90   :  { %v123_v21 = vpop.f32.mrf.mxu0 }
  0x91   :  { %v167_v46 = vmax.f32 %v123_v21, 0.0 }
  0x96   :  { %v156_v22 = vpop.f32.mrf.mxu2 }
  0x97   :  { %v178_v30 = vmax.f32 %v156_v22, 0.0 }
  0x98   :  { %v126_v23 = vpop.f32.mrf.mxu0 }
  0x99   :  { %v168_v45 = vmax.f32 %v126_v23, 0.0 }
  0x9e   :  { %v159_v24 = vpop.f32.mrf.mxu2 }
  0x9f   :  { %v179_v27 = vmax.f32 %v159_v24, 0.0 }
  0xa0   :  { %v129_v25 = vpop.f32.mrf.mxu0 }
  0xa1   :  { %v169_v44 = vmax.f32 %v129_v25, 0.0 }
  0xa6   :  { %v162_v26 = vpop.f32.mrf.mxu2 }
  0xa7   :  { %v180_v28 = vmax.f32 %v162_v26, 0.0 }
  0xa8   :  { %v132_v29 = vpop.f32.mrf.mxu0 }
  0xa9   :  { %181 = vmatpush.msra.mxu1 %v180_v28  ;;  %304 = vmatpush.msra.mxu3 %v180_v28  ;;  %v170_v43 = vmax.f32 %v132_v29, 0.0 }
  0xab   :  { %182 = vmatpush.msra.mxu1 %v179_v27  ;;  %305 = vmatpush.msra.mxu3 %v179_v27 }
  0xad   :  { %183 = vmatpush.msra.mxu1 %v178_v30  ;;  %306 = vmatpush.msra.mxu3 %v178_v30 }
  0xaf   :  { %184 = vmatpush.msra.mxu1 %v177_v31  ;;  %307 = vmatpush.msra.mxu3 %v177_v31 }
  0xb0   :  { %v135_v33 = vpop.f32.mrf.mxu0 }
  0xb1   :  { %185 = vmatpush.msra.mxu1 %v176_v32  ;;  %308 = vmatpush.msra.mxu3 %v176_v32  ;;  %v171_v42 = vmax.f32 %v135_v33, 0.0  ;;  %v49_v33 = vld [vmem:[%s472_s3] sm:$0x1] }
  0xb8   :  { %v138_v34 = vpop.f32.mrf.mxu0 }
  0xb9   :  { %v172_v41 = vmax.f32 %v138_v34, 0.0 }
  0xc0   :  { %v141_v35 = vpop.f32.mrf.mxu0 }
  0xc1   :  { %v173_v40 = vmax.f32 %v141_v35, 0.0 }
  0xc8   :  { %v144_v36 = vpop.f32.mrf.mxu0 }
  0xc9   :  { %v174_v39 = vmax.f32 %v144_v36, 0.0 }
  0xd0   :  { %v147_v37 = vpop.f32.mrf.mxu0 }
  0xd1   :  { %v175_v38 = vmax.f32 %v147_v37, 0.0 }
  0xd3   :  { %186 = vmatpush.msra.mxu1 %v175_v38  ;;  %309 = vmatpush.msra.mxu3 %v175_v38 }
  0xd5   :  { %187 = vmatpush.msra.mxu1 %v174_v39  ;;  %310 = vmatpush.msra.mxu3 %v174_v39 }
  0xd7   :  { %188 = vmatpush.msra.mxu1 %v173_v40  ;;  %311 = vmatpush.msra.mxu3 %v173_v40 }
  0xd9   :  { %189 = vmatpush.msra.mxu1 %v172_v41  ;;  %312 = vmatpush.msra.mxu3 %v172_v41 }
  0xdb   :  { %190 = vmatpush.msra.mxu1 %v171_v42  ;;  %313 = vmatpush.msra.mxu3 %v171_v42 }
  0xdd   :  { %191 = vmatpush.msra.mxu1 %v170_v43  ;;  %314 = vmatpush.msra.mxu3 %v170_v43 }
  0xdf   :  { %192 = vmatpush.msra.mxu1 %v169_v44  ;;  %315 = vmatpush.msra.mxu3 %v169_v44 }
  0xe1   :  { %193 = vmatpush.msra.mxu1 %v168_v45  ;;  %316 = vmatpush.msra.mxu3 %v168_v45 }
  0xe3   :  { %194 = vmatpush.msra.mxu1 %v167_v46  ;;  %317 = vmatpush.msra.mxu3 %v167_v46 }
  0xe5   :  { %195 = vmatpush.msra.mxu1 %v166_v47  ;;  %318 = vmatpush.msra.mxu3 %v166_v47 }
  0xe7   :  { %196 = vmatpush.msra.mxu1 %v165_v48  ;;  %319 = vmatpush.msra.mxu3 %v165_v48 }
  0xe8   :  { %221 = vmatmul.f32.vlgmr.msra.gmra.mxu3 %v41_v49  ;;  %197 = vmatmul.f32.vlgmr.msra.gmra.mxu1 %v33_v50 }
  0xf0   :  { %224 = vmatmul.f32.gmra.mxu3 %v42_v51  ;;  %200 = vmatmul.f32.gmra.mxu1 %v34_v52 }
  0xf8   :  { %227 = vmatmul.f32.gmra.mxu3 %v43_v53  ;;  %203 = vmatmul.f32.gmra.mxu1 %v35_v54 }
 0x100   :  { %230 = vmatmul.f32.gmra.mxu3 %v44_v55  ;;  %206 = vmatmul.f32.gmra.mxu1 %v36_v56 }
 0x108   :  { %233 = vmatmul.f32.gmra.mxu3 %v45_v57  ;;  %209 = vmatmul.f32.gmra.mxu1 %v37_v58 }
 0x110   :  { %236 = vmatmul.f32.gmra.mxu3 %v46_v59  ;;  %212 = vmatmul.f32.gmra.mxu1 %v38_v60 }
 0x118   :  { %239 = vmatmul.f32.gmra.mxu3 %v47_v61  ;;  %215 = vmatmul.f32.gmra.mxu1 %v39_v62 }
 0x120   :  { %242 = vmatmul.f32.gmra.mxu3 %v48_v63  ;;  %218 = vmatmul.f32.gmra.mxu1 %v40_v0 }
 0x165   :  { %v198_v1 = vpop.f32.mrf.mxu1 }
 0x166   :  { %v246_v32 = vmax.f32 %v198_v1, 0.0 }
 0x16b   :  { %v222_v2 = vpop.f32.mrf.mxu3 }
 0x16c   :  { %v254_v24 = vmax.f32 %v222_v2, 0.0 }
 0x16d   :  { %v201_v4 = vpop.f32.mrf.mxu1 }
 0x16e   :  { %v247_v31 = vmax.f32 %v201_v4, 0.0 }
 0x173   :  { %v225_v3 = vpop.f32.mrf.mxu3 }
 0x174   :  { %v255_v23 = vmax.f32 %v225_v3, 0.0 }
 0x175   :  { %v204_v6 = vpop.f32.mrf.mxu1 }
 0x176   :  { %v248_v30 = vmax.f32 %v204_v6, 0.0 }
 0x17b   :  { %v228_v5 = vpop.f32.mrf.mxu3 }
 0x17c   :  { %v256_v21 = vmax.f32 %v228_v5, 0.0 }
 0x17d   :  { %v207_v8 = vpop.f32.mrf.mxu1 }
 0x17e   :  { %v249_v29 = vmax.f32 %v207_v8, 0.0 }
 0x183   :  { %v231_v7 = vpop.f32.mrf.mxu3 }
 0x184   :  { %v257_v20 = vmax.f32 %v231_v7, 0.0 }
 0x185   :  { %v210_v10 = vpop.f32.mrf.mxu1 }
 0x186   :  { %v250_v28 = vmax.f32 %v210_v10, 0.0 }
 0x18b   :  { %v234_v9 = vpop.f32.mrf.mxu3 }
 0x18c   :  { %v258_v19 = vmax.f32 %v234_v9, 0.0 }
 0x18d   :  { %v213_v13 = vpop.f32.mrf.mxu1 }
 0x18e   :  { %v251_v27 = vmax.f32 %v213_v13, 0.0 }
 0x193   :  { %v237_v11 = vpop.f32.mrf.mxu3 }
 0x194   :  { %v259_v18 = vmax.f32 %v237_v11, 0.0 }
 0x195   :  { %v216_v16 = vpop.f32.mrf.mxu1 }
 0x196   :  { %v252_v26 = vmax.f32 %v216_v16, 0.0 }
 0x19b   :  { %v240_v12 = vpop.f32.mrf.mxu3 }
 0x19c   :  { %v260_v17 = vmax.f32 %v240_v12, 0.0 }
 0x19d   :  { %v219_v22 = vpop.f32.mrf.mxu1 }
 0x19e   :  { %v253_v25 = vmax.f32 %v219_v22, 0.0 }
 0x1a3   :  { %v243_v14 = vpop.f32.mrf.mxu3 }
 0x1a4   :  { %v261_v15 = vmax.f32 %v243_v14, 0.0 }
 0x1a6   :  { %262 = vmatpush.msrb.mxu2 %v261_v15 }
 0x1a8   :  { %263 = vmatpush.msrb.mxu2 %v260_v17 }
 0x1aa   :  { %264 = vmatpush.msrb.mxu2 %v259_v18 }
 0x1ac   :  { %265 = vmatpush.msrb.mxu2 %v258_v19 }
 0x1ae   :  { %266 = vmatpush.msrb.mxu2 %v257_v20 }
 0x1b0   :  { %267 = vmatpush.msrb.mxu2 %v256_v21 }
 0x1b2   :  { %268 = vmatpush.msrb.mxu2 %v255_v23 }
 0x1b4   :  { %269 = vmatpush.msrb.mxu2 %v254_v24 }
 0x1b6   :  { %270 = vmatpush.msrb.mxu2 %v253_v25 }
 0x1b8   :  { %271 = vmatpush.msrb.mxu2 %v252_v26 }
 0x1ba   :  { %272 = vmatpush.msrb.mxu2 %v251_v27 }
 0x1bc   :  { %273 = vmatpush.msrb.mxu2 %v250_v28 }
 0x1be   :  { %274 = vmatpush.msrb.mxu2 %v249_v29 }
 0x1c0   :  { %275 = vmatpush.msrb.mxu2 %v248_v30 }
 0x1c2   :  { %276 = vmatpush.msrb.mxu2 %v247_v31 }
 0x1c4   :  { %277 = vmatpush.msrb.mxu2 %v246_v32 }
 0x1c5   :  { %278 = vmatmul.f32.vlgmr.msrb.gmra.mxu2 %v49_v33 }
 0x248   :  { %v279_v34 = vpop.f32.mrf.mxu2 }
 0x249   :  { %282 = vst [vmem:[%s473_s4] sm:$0x1] %v279_v34 }

</bundles_post_ra>
